<compile_context>
chip_gen: v7x
topology: tpu7x:2x2x1
jax: 0.10.0
libtpu: 0.0.40
codegen_flags: <defaults>
</compile_context>

<pallas_src>
import functools

import jax
import jax.numpy as jnp
from jax.experimental import pallas as pl
from jax.experimental.pallas import tpu as pltpu


def _round_up(a, b):
    return (a + b - 1) // b * b


def _pad_cast(arr, shape, dtype):
    """Cast and (only if needed) zero-pad `arr` to `shape`."""
    arr = arr.astype(dtype)
    if tuple(arr.shape) == tuple(shape):
        return arr
    out = jnp.zeros(shape, dtype)
    return out.at[tuple(slice(0, s) for s in arr.shape)].set(arr)


def _vit_kernel(x_ref, w1t_ref, w2n_ref, y_ref, feat_ref, prob_ref, featn_ref,
                *, s, m, tc):
    # Grid: (batch block b, class tile c).  K is NOT tiled; w1t stays resident.
    c = pl.program_id(1)

    @pl.when(c == 0)
    def _fc1_and_normalize():
        # fc1: bf16 x bf16 -> f32 accumulate on the MXU.
        feat = jnp.dot(x_ref[...], w1t_ref[...],
                       preferred_element_type=jnp.float32)       # (TB, F_pad) f32
        feat_ref[...] = feat
        # F.normalize(feat, dim=1): feat / max(||feat||, 1e-12)
        #   == feat * rsqrt(max(||feat||^2, 1e-24))   (rsqrt -> EUP slot)
        norm2 = jnp.sum(feat * feat, axis=-1, keepdims=True)
        inv_norm = jax.lax.rsqrt(jnp.maximum(norm2, jnp.float32(1e-24)))
        # bf16 copy feeds the MXU for the classifier dot(s) below.
        featn_ref[...] = (feat * inv_norm).astype(featn_ref.dtype)

    # Classifier tile: cosine similarity against pre-normalized bf16 weights.
    cosine = jnp.dot(featn_ref[...], w2n_ref[...],
                     preferred_element_type=jnp.float32)          # (TB, TC) f32

    # Additive margin on the target class: prob = s * (cos - m * one_hot(y)).
    y = y_ref[...]                                                        # (TB, 1)
    cls_ids = jax.lax.broadcasted_iota(jnp.int32, cosine.shape, 1) + c * tc
    is_target = cls_ids == y
    prob_ref[...] = (
        jnp.where(is_target, cosine - jnp.float32(m), cosine) * jnp.float32(s)
    ).astype(prob_ref.dtype)


def prepare_params(w1, w2, *, max_tc=1024):
    """Parameter-only prep (transpose / normalize / bf16 cast / pad).

    Call once per weight update and reuse across forward calls.
    w1: [F, 4096] fc1 weight, w2: [C, F] classifier weight.
    """
    F_, K = w1.shape
    C, F2 = w2.shape
    assert F_ == F2, "classifier in_features must match fc1 out_features"

    F_pad = _round_up(F_, 128)
    c128 = _round_up(C, 128)
    tc = min(c128, max_tc)                      # classifier tiled over classes
    C_pad = _round_up(c128, tc)

    w1t = _pad_cast(w1.T, (K, F_pad), jnp.bfloat16)                       # (K, F_pad)
    w2n = w2 / jnp.maximum(jnp.linalg.norm(w2, axis=-1, keepdims=True), 1e-12)
    w2nt = _pad_cast(w2n.T, (F_pad, C_pad), jnp.bfloat16)                 # (F_pad, C_pad)

    return dict(w1t=w1t, w2nt=w2nt, num_features=F_, num_classes=C, tc=tc)


def vision_transformer_forward(x, y, params, *, s=64.0, m=0.35, tb=None):
    """x: [B, 4096] float, y: [B] int labels (or None), params from prepare_params."""
    w1t, w2nt = params["w1t"], params["w2nt"]
    F_, C, TC = params["num_features"], params["num_classes"], params["tc"]
    K, F_pad = w1t.shape
    _, C_pad = w2nt.shape

    x = x.reshape(x.shape[0], -1)
    B = x.shape[0]
    assert x.shape[1] == K

    # Batch tiling: a single full-batch block for small B (no pad, only the bf16
    # cast), otherwise 128-row blocks (MXU-friendly on all generations; 256 is a
    # reasonable bump for very large batches on v6e/v7x).
    if tb is None:
        tb = B if B <= 128 else 128
    B_pad = _round_up(B, tb)

    x_p = _pad_cast(x, (B_pad, K), jnp.bfloat16)
    if y is None:
        y_p = jnp.full((B_pad, 1), -1, jnp.int32)        # -1 never matches -> no margin
    else:
        y_p = jnp.full((B_pad, 1), -1, jnp.int32).at[:B, 0].set(y.astype(jnp.int32))
    # TODO(synk): y could live in SMEM via scalar prefetch; kept as a tiny VMEM
    # block since the margin mask is built vectorized against an iota.

    grid = (B_pad // tb, C_pad // TC)

    # Scoped-VMEM budget: resident w1t + double-buffered tiles + outputs + scratch,
    # with headroom, clamped so it also fits v7x's 64 MiB physical VMEM.
    est = (2 * tb * K * 2            # x tile (double-buffered, bf16)
           + 2 * K * F_pad * 2       # resident w1.T (bf16)
           + 2 * F_pad * TC * 2      # w2n tile (bf16)
           + 2 * tb * F_pad * 4      # feat output (f32)
           + 2 * tb * TC * 4         # prob output (f32)
           + tb * F_pad * 2          # feat_n scratch (bf16)
           + 2 * tb * 128 * 4)       # labels
    vmem_limit = int(min(max(est + (8 << 20), 32 << 20), 56 << 20))

    kernel = functools.partial(_vit_kernel, s=float(s), m=float(m), tc=TC)

    feat_p, prob_p = pl.pallas_call(
        kernel,
        out_shape=(
            jax.ShapeDtypeStruct((B_pad, F_pad), jnp.float32),
            jax.ShapeDtypeStruct((B_pad, C_pad), jnp.float32),
        ),
        grid_spec=pltpu.PrefetchScalarGridSpec(
            num_scalar_prefetch=0,
            grid=grid,
            in_specs=[
                pl.BlockSpec((tb, K), lambda b, c: (b, 0)),        # activations
                pl.BlockSpec((K, F_pad), lambda b, c: (0, 0)),     # fc1 W.T (resident)
                pl.BlockSpec((F_pad, TC), lambda b, c: (0, c)),    # normalized W2.T tile
                pl.BlockSpec((tb, 1), lambda b, c: (b, 0)),        # labels
            ],
            out_specs=(
                pl.BlockSpec((tb, F_pad), lambda b, c: (b, 0)),    # feat
                pl.BlockSpec((tb, TC), lambda b, c: (b, c)),       # prob (lane-dense)
            ),
            scratch_shapes=[pltpu.VMEM((tb, F_pad), jnp.bfloat16)],
        ),
        compiler_params=pltpu.CompilerParams(
            # TODO(synk): on v7x with a single batch block only one TensorCore is
            # used; the class axis must stay "arbitrary" so the feat scratch
            # persists across class tiles.
            dimension_semantics=("parallel", "arbitrary"),
            vmem_limit_bytes=vmem_limit,
        ),
    )(x_p, w1t, w2nt, y_p)

    return feat_p[:B, :F_], prob_p[:B, :C]


def _reference(x, w1, w2, y, s=64.0, m=0.35):
    # Mirrors the kernel's bf16 quantization of the matmul operands (fc1 inputs,
    # normalized features, normalized classifier weight); accumulation is f32 on
    # both sides.  The original f32 PyTorch module differs from this by ~1e-3
    # relative on the matmul inputs.
    xb = x.astype(jnp.bfloat16).astype(jnp.float32)
    w1b = w1.astype(jnp.bfloat16).astype(jnp.float32)
    feat = jnp.dot(xb, w1b.T, precision=jax.lax.Precision.HIGHEST)
    fn = feat / jnp.maximum(jnp.linalg.norm(feat, axis=-1, keepdims=True), 1e-12)
    wn = w2 / jnp.maximum(jnp.linalg.norm(w2, axis=-1, keepdims=True), 1e-12)
    fnb = fn.astype(jnp.bfloat16).astype(jnp.float32)
    wnb = wn.astype(jnp.bfloat16).astype(jnp.float32)
    cos = jnp.dot(fnb, wnb.T, precision=jax.lax.Precision.HIGHEST)
    oh = jax.nn.one_hot(y, w2.shape[0], dtype=cos.dtype)
    return feat, s * (cos - m * oh)


if __name__ == "__main__":
    B = 8            # batch
    IN = 4096        # fc1 input dim (fixed by the module: Linear(4096, num_features))
    NUM_FEATURES = 128
    NUM_CLASSES = 16

    key = jax.random.PRNGKey(0)
    kx, kw1, kw2, ky = jax.random.split(key, 4)

    x = jax.random.normal(kx, (B, IN), dtype=jnp.float32)
    w1 = 0.02 * jax.random.normal(kw1, (NUM_FEATURES, IN), dtype=jnp.float32)
    w2 = jax.random.normal(kw2, (NUM_CLASSES, NUM_FEATURES), dtype=jnp.float32)
    y = jax.random.randint(ky, (B,), 0, NUM_CLASSES, dtype=jnp.int32)

    params = prepare_params(w1, w2)          # hoisted parameter prep (cacheable)
    feat, prob = vision_transformer_forward(x, y, params)
    jax.block_until_ready((feat, prob))

    feat_ref, prob_ref = _reference(x, w1, w2, y)

    assert jnp.allclose(feat, feat_ref, atol=2e-2, rtol=2e-2), "feat mismatch"
    assert jnp.allclose(prob, prob_ref, atol=2e-2, rtol=2e-2), "prob mismatch"

    print("KERNEL_OK")
</pallas_src>

<mosaic_0001>
module attributes {stable_mosaic.version = 11 : i64} {
  func.func @_vit_kernel(%arg0: i32, %arg1: i32, %arg2: memref<8x4096xbf16, #tpu.memory_space<vmem>>, %arg3: memref<4096x128xbf16, #tpu.memory_space<vmem>>, %arg4: memref<128x128xbf16, #tpu.memory_space<vmem>>, %arg5: memref<8x1xi32, #tpu.memory_space<vmem>>, %arg6: memref<8x128xf32, #tpu.memory_space<vmem>>, %arg7: memref<8x128xf32, #tpu.memory_space<vmem>>, %arg8: memref<8x128xbf16, #tpu.memory_space<vmem>>) attributes {dimension_semantics = [#tpu.dimension_semantics<parallel>, #tpu.dimension_semantics<arbitrary>], iteration_bounds = array<i64: 1, 1>, scalar_prefetch = 0 : i64, scratch_operands = 1 : i64, tpu.core_type = #tpu.core_type<tc>, window_params = [{transform_indices = @transform_0, window_bounds = array<i64: 8, 4096>}, {pipeline_mode = #tpu.pipeline_mode<synchronous>, transform_indices = @transform_1, window_bounds = array<i64: 4096, 128>}, {transform_indices = @transform_2, window_bounds = array<i64: 128, 128>}, {transform_indices = @transform_3, window_bounds = array<i64: 8, 1>}, {transform_indices = @transform_4, window_bounds = array<i64: 8, 128>}, {transform_indices = @transform_5, window_bounds = array<i64: 8, 128>}]} {
    %c0_i32 = arith.constant 0 : i32
    %0 = arith.cmpi eq, %arg1, %c0_i32 : i32
    %1 = arith.extui %0 : i1 to i32
    %c0_i32_0 = arith.constant 0 : i32
    %2 = arith.cmpi ne, %1, %c0_i32_0 : i32
    scf.if %2 {
      %c0_10 = arith.constant 0 : index
      %c0_11 = arith.constant 0 : index
      %19 = vector.load %arg2[%c0_10, %c0_11] : memref<8x4096xbf16, #tpu.memory_space<vmem>>, vector<8x4096xbf16>
      %c0_12 = arith.constant 0 : index
      %c0_13 = arith.constant 0 : index
      %20 = vector.load %arg3[%c0_12, %c0_13] : memref<4096x128xbf16, #tpu.memory_space<vmem>>, vector<4096x128xbf16>
      %cst_14 = arith.constant dense<0.000000e+00> : vector<8x128xf32>
      %21 = tpu.matmul %19, %20, %cst_14 {dimension_numbers = #tpu.dot_dimension_numbers<[1], [0], [0], [1], [0, 0, 1, 1], [], []>} : vector<8x4096xbf16>, vector<4096x128xbf16>, vector<8x128xf32> -> vector<8x128xf32>
      %c0_15 = arith.constant 0 : index
      %c0_16 = arith.constant 0 : index
      %22 = vector.load %arg6[%c0_15, %c0_16] : memref<8x128xf32, #tpu.memory_space<vmem>>, vector<8x128xf32>
      tpu.vector_store %arg6[%c0_15, %c0_16], %21 {strides = array<i32>} : memref<8x128xf32, #tpu.memory_space<vmem>>, vector<8x128xf32>,
      %23 = arith.mulf %21, %21 : vector<8x128xf32>
      %cst_17 = arith.constant dense<0.000000e+00> : vector<8xf32>
      %24 = vector.multi_reduction <add>, %23, %cst_17 [1] : vector<8x128xf32> to vector<8xf32>
      %25 = vector.shape_cast %24 : vector<8xf32> to vector<8x1xf32>
      %cst_18 = arith.constant 1.000000e-24 : f32
      %26 = vector.broadcast %cst_18 : f32 to vector<8x1xf32>
      %27 = arith.maximumf %25, %26 : vector<8x1xf32>
      %28 = math.rsqrt %27 : vector<8x1xf32>
      %29 = vector.broadcast %28 : vector<8x1xf32> to vector<8x128xf32>
      %30 = arith.mulf %21, %29 : vector<8x128xf32>
      %31 = arith.truncf %30 : vector<8x128xf32> to vector<8x128xbf16>
      %c0_19 = arith.constant 0 : index
      %c0_20 = arith.constant 0 : index
      %32 = vector.load %arg8[%c0_19, %c0_20] : memref<8x128xbf16, #tpu.memory_space<vmem>>, vector<8x128xbf16>
      tpu.vector_store %arg8[%c0_19, %c0_20], %31 {strides = array<i32>} : memref<8x128xbf16, #tpu.memory_space<vmem>>, vector<8x128xbf16>,
    } else {
    }
    %c0 = arith.constant 0 : index
    %c0_1 = arith.constant 0 : index
    %3 = vector.load %arg8[%c0, %c0_1] : memref<8x128xbf16, #tpu.memory_space<vmem>>, vector<8x128xbf16>
    %c0_2 = arith.constant 0 : index
    %c0_3 = arith.constant 0 : index
    %4 = vector.load %arg4[%c0_2, %c0_3] : memref<128x128xbf16, #tpu.memory_space<vmem>>, vector<128x128xbf16>
    %cst = arith.constant dense<0.000000e+00> : vector<8x128xf32>
    %5 = tpu.matmul %3, %4, %cst {dimension_numbers = #tpu.dot_dimension_numbers<[1], [0], [0], [1], [0, 0, 1, 1], [], []>} : vector<8x128xbf16>, vector<128x128xbf16>, vector<8x128xf32> -> vector<8x128xf32>
    %c0_4 = arith.constant 0 : index
    %c0_5 = arith.constant 0 : index
    %6 = vector.load %arg5[%c0_4, %c0_5] : memref<8x1xi32, #tpu.memory_space<vmem>>, vector<8x1xi32>
    %7 = tpu.iota {dimensions = array<i32: 1>} : vector<8x128xi32>
    %c128_i32 = arith.constant 128 : i32
    %8 = arith.muli %arg1, %c128_i32 : i32
    %9 = vector.broadcast %8 : i32 to vector<8x128xi32>
    %10 = arith.addi %7, %9 : vector<8x128xi32>
    %11 = vector.broadcast %6 : vector<8x1xi32> to vector<8x128xi32>
    %12 = arith.cmpi eq, %10, %11 : vector<8x128xi32>
    %cst_6 = arith.constant 3.500000e-01 : f32
    %13 = vector.broadcast %cst_6 : f32 to vector<8x128xf32>
    %14 = arith.subf %5, %13 : vector<8x128xf32>
    %15 = arith.select %12, %14, %5 : vector<8x128xi1>, vector<8x128xf32>
    %cst_7 = arith.constant 6.400000e+01 : f32
    %16 = vector.broadcast %cst_7 : f32 to vector<8x128xf32>
    %17 = arith.mulf %15, %16 : vector<8x128xf32>
    %c0_8 = arith.constant 0 : index
    %c0_9 = arith.constant 0 : index
    %18 = vector.load %arg7[%c0_8, %c0_9] : memref<8x128xf32, #tpu.memory_space<vmem>>, vector<8x128xf32>
    tpu.vector_store %arg7[%c0_8, %c0_9], %17 {strides = array<i32>} : memref<8x128xf32, #tpu.memory_space<vmem>>, vector<8x128xf32>,
    return
  }
  func.func @transform_0(%arg0: i32, %arg1: i32) -> (i32, i32) {
    %c0_i32 = arith.constant 0 : i32
    %c0_i32_0 = arith.constant 0 : i32
    return %arg0, %c0_i32 : i32, i32
  }
  func.func @transform_1(%arg0: i32, %arg1: i32) -> (i32, i32) {
    %c0_i32 = arith.constant 0 : i32
    %c0_i32_0 = arith.constant 0 : i32
    %c0_i32_1 = arith.constant 0 : i32
    return %c0_i32, %c0_i32_0 : i32, i32
  }
  func.func @transform_2(%arg0: i32, %arg1: i32) -> (i32, i32) {
    %c0_i32 = arith.constant 0 : i32
    %c0_i32_0 = arith.constant 0 : i32
    return %c0_i32, %arg1 : i32, i32
  }
  func.func @transform_3(%arg0: i32, %arg1: i32) -> (i32, i32) {
    %c0_i32 = arith.constant 0 : i32
    %c0_i32_0 = arith.constant 0 : i32
    return %arg0, %c0_i32 : i32, i32
  }
  func.func @transform_4(%arg0: i32, %arg1: i32) -> (i32, i32) {
    %c0_i32 = arith.constant 0 : i32
    %c0_i32_0 = arith.constant 0 : i32
    return %arg0, %c0_i32 : i32, i32
  }
  func.func @transform_5(%arg0: i32, %arg1: i32) -> (i32, i32) {
    %c0_i32 = arith.constant 0 : i32
    return %arg0, %arg1 : i32, i32
  }
}

</mosaic_0001>

<bundles_post_ra>
// kernel: tpu_custom_call.1
= control target key start
LH: loop header
LB: loop body
LE: loop exit
PB: predicated region body
PF: predicated region fallthrough
CT: control target
= control target key end

     0   :  { %11 = vsyncpa [#allocation4], 0  ;;  %s4262_s0 = inlined_call_operand.hbm [shape: bf16[8,4096], index: 0, kind: input, shape index: {}]   ;;  %s4263_s1 = inlined_call_operand.hbm [shape: bf16[4096,128], index: 1, kind: input, shape index: {}]   ;;  %s4264_s2 = inlined_call_operand.hbm [shape: bf16[128,128], index: 2, kind: input, shape index: {}]   ;;  %s4265_s3 = inlined_call_operand.vmem [shape: s32[8,1], index: 3, kind: input, shape index: {}]   ;;  %s4266_s4 = inlined_call_operand.hbm [shape: f32[8,128], index: 4, kind: output, shape index: {0}]   ;;  %s4267_s5 = inlined_call_operand.hbm [shape: f32[8,128], index: 5, kind: output, shape index: {1}]  }
   0x1   :  { %12 = vsyncpa [#allocation7], 0 }
   0x2   :  { %13 = vsyncpa [#allocation5], 0 }
   0x3   :  { %14 = vsyncpa [#allocation11], 0  ;;  %s4144_s18 = smov [#allocation6]   ;;  %s4026_s22 = scalar_lea.hbm %s4263_s1, 32768 }
   0x4   :  { %s30_s19 = sshll.u32 %s4144_s18, 4  ;;  %p4027_p0 = scmp.ne.s32.totalorder %s4263_s1, %s4026_s22  ;;  %s31_s19 = int_to_ptr.vmem [resolvable:$true] %s30_s19 }
   0x5   :  { %p4030_p1 = scmp.lt.u32.totalorder %s4026_s22, %s4263_s1 }
   0x7   :  { %p4032_p2 = pnand %p4030_p1, %p4027_p0 }
   0x9   :  { %4035 = shalt.err (!%p4032_p2)
}
   0xa   :  { %s4036_s27 = scalar_lea.vmem %s31_s19, 32768  ;;  %p4041_p4 = scmp.lt.s32.totalorder %s31_s19, %s31_s19 }
   0xb   :  { %p4037_p3 = scmp.ne.s32.totalorder %s31_s19, %s4036_s27  ;;  %p4042_p5 = scmp.lt.s32.totalorder %s4036_s27, %s4036_s27 }
   0xd   :  { %p4043_p6 = por %p4042_p5, %p4041_p4 }
   0xf   :  { %p4044_p7 = pnand %p4043_p6, %p4037_p3 }
  0x11   :  { %4047 = shalt.err (!%p4044_p7)
}
  0x12   :  { %s4145_s28 = smov 64   ;;  %s4146_s29 = smov 4  }
  0x13   :  { %36 = dma.hbm_to_vmem [thread:$0]  %s4263_s1, 32768, %s31_s19, [#allocation7], %s4145_s28, %s4145_s28, %s4146_s29  }
  0x14   :  { %s4147_s7 = smov [#allocation3]   ;;  %s4148_s9 = smov [#allocation8]  }
  0x15   :  { %s21_s8 = sshll.u32 %s4147_s7, 4  ;;  %s42_s10 = sshll.u32 %s4148_s9, 4  ;;  %s22_s8 = int_to_ptr.vmem [resolvable:$true] %s21_s8  ;;  %s43_s10 = int_to_ptr.vmem [resolvable:$true] %s42_s10 }
  0x16   :  { %s4048_s13 = scalar_lea.hbm %s4262_s0, 2048 }
  0x17   :  { %p4049_p8 = scmp.ne.s32.totalorder %s4262_s0, %s4048_s13  ;;  %p4052_p9 = scmp.lt.u32.totalorder %s4048_s13, %s4262_s0 }
  0x19   :  { %p4054_p10 = pnand %p4052_p9, %p4049_p8 }
  0x1b   :  { %4057 = shalt.err (!%p4054_p10)
}
  0x1c   :  { %s4058_s1 = scalar_lea.vmem %s22_s8, 2048  ;;  %p4063_p12 = scmp.lt.s32.totalorder %s22_s8, %s22_s8 }
  0x1d   :  { %p4059_p11 = scmp.ne.s32.totalorder %s22_s8, %s4058_s1  ;;  %p4064_p13 = scmp.lt.s32.totalorder %s4058_s1, %s4058_s1 }
  0x1f   :  { %p4065_p0 = por %p4064_p13, %p4063_p12 }
  0x21   :  { %p4066_p1 = pnand %p4065_p0, %p4059_p11 }
  0x23   :  { %4069 = shalt.err (!%p4066_p1)
}
  0x24   :  { %24 = dma.hbm_to_vmem [thread:$0]  %s4262_s0, 2048, %s22_s8, [#allocation4]  }
  0x25   :  { %s4070_s22 = scalar_lea.hbm %s4264_s2, 1024 }
  0x26   :  { %p4071_p2 = scmp.ne.s32.totalorder %s4264_s2, %s4070_s22  ;;  %p4074_p3 = scmp.lt.u32.totalorder %s4070_s22, %s4264_s2 }
  0x28   :  { %p4076_p4 = pnand %p4074_p3, %p4071_p2 }
  0x2a   :  { %4079 = shalt.err (!%p4076_p4)
}
  0x2b   :  { %s4080_s27 = scalar_lea.vmem %s43_s10, 1024  ;;  %p4085_p6 = scmp.lt.s32.totalorder %s43_s10, %s43_s10 }
  0x2c   :  { %p4081_p5 = scmp.ne.s32.totalorder %s43_s10, %s4080_s27  ;;  %p4086_p7 = scmp.lt.s32.totalorder %s4080_s27, %s4080_s27 }
  0x2e   :  { %p4087_p8 = por %p4086_p7, %p4085_p6 }
  0x30   :  { %p4088_p9 = pnand %p4087_p8, %p4081_p5 }
  0x32   :  { %4091 = shalt.err (!%p4088_p9)
}
  0x33   :  { %48 = dma.hbm_to_vmem [thread:$0]  %s4264_s2, 1024, %s43_s10, [#allocation7], %s4145_s28, %s4145_s28, %s4146_s29  }
  0x34   :  { %4136 = dma.done.wait [#allocation4], 2048  }
  0x35   :  { %4137 = vsyncadd [#allocation4], 4294965248 }
  0x36   :  { %4138 = dma.done.wait [#allocation7], 33792  }
  0x37   :  { %4139 = vsyncadd [#allocation7], 4294933504  ;;  %v3728_v0 = vld [vmem:[#allocation6 + $0x40] sm:$0xff]   ;;  %v3732_v4 = vld [vmem:[#allocation6 + $0x48] sm:$0xff]   ;;  %vm4150_vm0 = vmmov 0   ;;  %s4152_s29 = smov [#allocation9]  }
  0x38   :  { %v3729_v1 = vld [vmem:[#allocation6 + $0xc0] sm:$0xff]   ;;  %3336 = vmatprep.subr.bf16.mxu0 %v3728_v0  ;;  %v3733_v5 = vld [vmem:[#allocation6 + $0xc8] sm:$0xff]   ;;  %v3736_v8 = vld [vmem:[#allocation6 + $0x50] sm:$0xff]   ;;  %s3015_s6 = sshll.u32 %s4152_s29, 4  ;;  %s3016_s6 = int_to_ptr.vmem [resolvable:$true] %s3015_s6 }
  0x39   :  { %v3730_v2 = vld [vmem:[#allocation6] sm:$0xff]   ;;  %3358 = vmatprep.subr.bf16.mxu1 %v3729_v1  ;;  %v3734_v6 = vld [vmem:[#allocation6 + $0x8] sm:$0xff]   ;;  %v3737_v9 = vld [vmem:[#allocation6 + $0xd0] sm:$0xff]   ;;  %s4092_s7 = scalar_lea.vmem %s3016_s6, 128  ;;  %p4097_p11 = scmp.lt.s32.totalorder %s3016_s6, %s3016_s6 }
  0x3a   :  { %v3731_v3 = vld [vmem:[#allocation6 + $0x80] sm:$0xff]   ;;  %3337 = vmatpush3.bf16.msra.mxu0 %v3730_v2  ;;  %v3735_v7 = vld [vmem:[#allocation6 + $0x88] sm:$0xff]   ;;  %v3738_v10 = vld [vmem:[#allocation6 + $0x10] sm:$0xff]   ;;  %p4093_p10 = scmp.ne.s32.totalorder %s3016_s6, %s4092_s7  ;;  %p4098_p12 = scmp.lt.s32.totalorder %s4092_s7, %s4092_s7 }
  0x3b   :  { %3359 = vmatpush3.bf16.msra.mxu1 %v3731_v3  ;;  %3338 = vmatprep.subr.bf16.mxu0 %v3732_v4  ;;  %v3739_v11 = vld [vmem:[#allocation6 + $0x90] sm:$0xff]   ;;  %v3740_v12 = vld [vmem:[#allocation6 + $0x58] sm:$0xff]   ;;  %v3744_v16 = vld [vmem:[#allocation6 + $0x60] sm:$0xff]  }
  0x3c   :  { %3360 = vmatprep.subr.bf16.mxu1 %v3733_v5  ;;  %v3741_v13 = vld [vmem:[#allocation6 + $0xd8] sm:$0xff]   ;;  %v3745_v17 = vld [vmem:[#allocation6 + $0xe0] sm:$0xff]   ;;  %v3748_v20 = vld [vmem:[#allocation6 + $0x68] sm:$0xff]   ;;  %p4099_p13 = por %p4098_p12, %p4097_p11 }
  0x3d   :  { %v3742_v14 = vld [vmem:[#allocation6 + $0x18] sm:$0xff]   ;;  %v3746_v18 = vld [vmem:[#allocation6 + $0x20] sm:$0xff]   ;;  %v3749_v21 = vld [vmem:[#allocation6 + $0xe8] sm:$0xff]  }
  0x3e   :  { %3339 = vmatpush3.bf16.msra.mxu0 %v3734_v6  ;;  %v3743_v15 = vld [vmem:[#allocation6 + $0x98] sm:$0xff]   ;;  %v3747_v19 = vld [vmem:[#allocation6 + $0xa0] sm:$0xff]   ;;  %v3750_v22 = vld [vmem:[#allocation6 + $0x28] sm:$0xff]   ;;  %p4100_p0 = pnand %p4099_p13, %p4093_p10 }
  0x3f   :  { %3361 = vmatpush3.bf16.msra.mxu1 %v3735_v7  ;;  %3340 = vmatprep.subr.bf16.mxu0 %v3736_v8  ;;  %v3751_v23 = vld [vmem:[#allocation6 + $0xa8] sm:$0xff]   ;;  %v3752_v24 = vld [vmem:[#allocation6 + $0x70] sm:$0xff]   ;;  %v3756_v28 = vld [vmem:[#allocation6 + $0x78] sm:$0xff]  }
  0x40   :  { %3362 = vmatprep.subr.bf16.mxu1 %v3737_v9  ;;  %v3753_v25 = vld [vmem:[#allocation6 + $0xf0] sm:$0xff]   ;;  %v3757_v29 = vld [vmem:[#allocation6 + $0xf8] sm:$0xff]   ;;  %v65_v32 = vld [vmem:[#allocation3] sm:$0xff] }
  0x41   :  { %v3754_v26 = vld [vmem:[#allocation6 + $0x30] sm:$0xff]   ;;  %v3758_v30 = vld [vmem:[#allocation6 + $0x38] sm:$0xff]   ;;  %v66_v33 = vld [vmem:[#allocation3 + $0x8] sm:$0xff]  ;;  %v3039_v34 = vcombine.low %v65_v32, %v65_v32  ;;  %v3040_v35 = vcombine.high %v65_v32, %v65_v32 }
  0x42   :  { %3341 = vmatpush3.bf16.msra.mxu0 %v3738_v10  ;;  %v3755_v27 = vld [vmem:[#allocation6 + $0xb0] sm:$0xff]   ;;  %v3759_v31 = vld [vmem:[#allocation6 + $0xb8] sm:$0xff]   ;;  %v3041_v36 = vcombine.low %v66_v33, %v66_v33  ;;  %v3042_v37 = vcombine.high %v66_v33, %v66_v33  ;;  %v3764_v38 = vld [vmem:[#allocation6 + $0x140] sm:$0xff]  }
  0x43   :  { %3363 = vmatpush3.bf16.msra.mxu1 %v3739_v11  ;;  %3342 = vmatprep.subr.bf16.mxu0 %v3740_v12  ;;  %v3765_v39 = vld [vmem:[#allocation6 + $0x1c0] sm:$0xff]   ;;  %v3768_v42 = vld [vmem:[#allocation6 + $0x148] sm:$0xff]   ;;  %v3772_v46 = vld [vmem:[#allocation6 + $0x150] sm:$0xff]  }
  0x44   :  { %3364 = vmatprep.subr.bf16.mxu1 %v3741_v13  ;;  %2273 = vmatprep.mubr.bf16.mxu0 %v3040_v35  ;;  %v3766_v40 = vld [vmem:[#allocation6 + $0x100] sm:$0xff]   ;;  %v3769_v43 = vld [vmem:[#allocation6 + $0x1c8] sm:$0xff]   ;;  %v3773_v47 = vld [vmem:[#allocation6 + $0x1d0] sm:$0xff]  }
  0x45   :  { %2313 = vmatprep.mubr.bf16.mxu1 %v3042_v37  ;;  %v3767_v41 = vld [vmem:[#allocation6 + $0x180] sm:$0xff]   ;;  %v3770_v44 = vld [vmem:[#allocation6 + $0x108] sm:$0xff]   ;;  %v3774_v48 = vld [vmem:[#allocation6 + $0x110] sm:$0xff]  }
  0x46   :  { %3343 = vmatpush3.bf16.msra.mxu0 %v3742_v14  ;;  %v3771_v45 = vld [vmem:[#allocation6 + $0x188] sm:$0xff]   ;;  %v3775_v49 = vld [vmem:[#allocation6 + $0x190] sm:$0xff]   ;;  %v3776_v50 = vld [vmem:[#allocation6 + $0x158] sm:$0xff]  }
  0x47   :  { %3365 = vmatpush3.bf16.msra.mxu1 %v3743_v15  ;;  %3344 = vmatprep.subr.bf16.mxu0 %v3744_v16  ;;  %v3777_v51 = vld [vmem:[#allocation6 + $0x1d8] sm:$0xff]   ;;  %v3780_v54 = vld [vmem:[#allocation6 + $0x160] sm:$0xff]   ;;  %v3784_v58 = vld [vmem:[#allocation6 + $0x168] sm:$0xff]  }
  0x48   :  { %3366 = vmatprep.subr.bf16.mxu1 %v3745_v17  ;;  %v3778_v52 = vld [vmem:[#allocation6 + $0x118] sm:$0xff]   ;;  %v3781_v55 = vld [vmem:[#allocation6 + $0x1e0] sm:$0xff]   ;;  %v3785_v59 = vld [vmem:[#allocation6 + $0x1e8] sm:$0xff]  }
  0x49   :  { %v3779_v53 = vld [vmem:[#allocation6 + $0x198] sm:$0xff]   ;;  %v3782_v56 = vld [vmem:[#allocation6 + $0x120] sm:$0xff]   ;;  %v3786_v60 = vld [vmem:[#allocation6 + $0x128] sm:$0xff]  }
  0x4a   :  { %3345 = vmatpush3.bf16.msra.mxu0 %v3746_v18  ;;  %v3783_v57 = vld [vmem:[#allocation6 + $0x1a0] sm:$0xff]   ;;  %v3787_v61 = vld [vmem:[#allocation6 + $0x1a8] sm:$0xff]   ;;  %v3788_v62 = vld [vmem:[#allocation6 + $0x170] sm:$0xff]  }
  0x4b   :  { %3367 = vmatpush3.bf16.msra.mxu1 %v3747_v19  ;;  %3346 = vmatprep.subr.bf16.mxu0 %v3748_v20  ;;  %v3789_v63 = vld [vmem:[#allocation6 + $0x1f0] sm:$0xff]   ;;  %v3792_v2 = vld [vmem:[#allocation6 + $0x178] sm:$0xff]   ;;  %v3800_v12 = vld [vmem:[#allocation6 + $0x240] sm:$0xff]  }
  0x4c   :  { %3368 = vmatprep.subr.bf16.mxu1 %v3749_v21  ;;  %v3790_v0 = vld [vmem:[#allocation6 + $0x130] sm:$0xff]   ;;  %v3793_v3 = vld [vmem:[#allocation6 + $0x1f8] sm:$0xff]   ;;  %v3801_v13 = vld [vmem:[#allocation6 + $0x2c0] sm:$0xff]  }
  0x4d   :  { %v3791_v1 = vld [vmem:[#allocation6 + $0x1b0] sm:$0xff]   ;;  %v3794_v4 = vld [vmem:[#allocation6 + $0x138] sm:$0xff]   ;;  %v3802_v14 = vld [vmem:[#allocation6 + $0x200] sm:$0xff]  }
  0x4e   :  { %3347 = vmatpush3.bf16.msra.mxu0 %v3750_v22  ;;  %v3795_v5 = vld [vmem:[#allocation6 + $0x1b8] sm:$0xff]   ;;  %v67_v6 = vld [vmem:[#allocation3 + $0x10] sm:$0xff]  ;;  %v3803_v15 = vld [vmem:[#allocation6 + $0x280] sm:$0xff]  }
  0x4f   :  { %3369 = vmatpush3.bf16.msra.mxu1 %v3751_v23  ;;  %3348 = vmatprep.subr.bf16.mxu0 %v3752_v24  ;;  %v3043_v7 = vcombine.low %v67_v6, %v67_v6  ;;  %v3044_v8 = vcombine.high %v67_v6, %v67_v6  ;;  %v68_v9 = vld [vmem:[#allocation3 + $0x18] sm:$0xff]  ;;  %v3804_v16 = vld [vmem:[#allocation6 + $0x248] sm:$0xff]   ;;  %v3808_v20 = vld [vmem:[#allocation6 + $0x250] sm:$0xff]  }
  0x50   :  { %3370 = vmatprep.subr.bf16.mxu1 %v3753_v25  ;;  %v3045_v10 = vcombine.low %v68_v9, %v68_v9  ;;  %v3046_v11 = vcombine.high %v68_v9, %v68_v9  ;;  %v3805_v17 = vld [vmem:[#allocation6 + $0x2c8] sm:$0xff]   ;;  %v3809_v21 = vld [vmem:[#allocation6 + $0x2d0] sm:$0xff]   ;;  %v3812_v24 = vld [vmem:[#allocation6 + $0x258] sm:$0xff]  }
  0x51   :  { %v3806_v18 = vld [vmem:[#allocation6 + $0x208] sm:$0xff]   ;;  %v3810_v22 = vld [vmem:[#allocation6 + $0x210] sm:$0xff]   ;;  %v3813_v25 = vld [vmem:[#allocation6 + $0x2d8] sm:$0xff]  }
  0x52   :  { %3349 = vmatpush3.bf16.msra.mxu0 %v3754_v26  ;;  %v3807_v19 = vld [vmem:[#allocation6 + $0x288] sm:$0xff]   ;;  %v3811_v23 = vld [vmem:[#allocation6 + $0x290] sm:$0xff]   ;;  %v3814_v26 = vld [vmem:[#allocation6 + $0x218] sm:$0xff]  }
  0x53   :  { %3371 = vmatpush3.bf16.msra.mxu1 %v3755_v27  ;;  %3350 = vmatprep.subr.bf16.mxu0 %v3756_v28  ;;  %v3815_v27 = vld [vmem:[#allocation6 + $0x298] sm:$0xff]   ;;  %v3816_v28 = vld [vmem:[#allocation6 + $0x260] sm:$0xff]   ;;  %v3820_v32 = vld [vmem:[#allocation6 + $0x268] sm:$0xff]  }
  0x54   :  { %3372 = vmatprep.subr.bf16.mxu1 %v3757_v29  ;;  %v3817_v29 = vld [vmem:[#allocation6 + $0x2e0] sm:$0xff]   ;;  %v3821_v33 = vld [vmem:[#allocation6 + $0x2e8] sm:$0xff]   ;;  %v3825_v37 = vld [vmem:[#allocation6 + $0x2f0] sm:$0xff]  }
  0x55   :  { %v3823_v35 = vld [vmem:[#allocation6 + $0x2a8] sm:$0xff]  }
  0x56   :  { %3351 = vmatpush3.bf16.msra.mxu0 %v3758_v30  ;;  %v3818_v30 = vld [vmem:[#allocation6 + $0x220] sm:$0xff]   ;;  %v3856_v6 = vld [vmem:[#allocation6 + $0x368] sm:$0xff]  }
  0x57   :  { %3373 = vmatpush3.bf16.msra.mxu1 %v3759_v31  ;;  %3380 = vmatprep.subr.bf16.mxu0 %v3764_v38  ;;  %v3819_v31 = vld [vmem:[#allocation6 + $0x2a0] sm:$0xff]   ;;  %v3826_v38 = vld [vmem:[#allocation6 + $0x230] sm:$0xff]   ;;  %v3859_v9 = vld [vmem:[#allocation6 + $0x3a8] sm:$0xff]  }
  0x58   :  { %3402 = vmatprep.subr.bf16.mxu1 %v3765_v39  ;;  %v3827_v39 = vld [vmem:[#allocation6 + $0x2b0] sm:$0xff]  }
  0x59   :  { %2274 = vmatmul.mubr.bf16.vlgmr.msra.gmra.mrb[0].mxu0 %v3039_v34  ;;  %v3822_v34 = vld [vmem:[#allocation6 + $0x228] sm:$0xff]  }
  0x5a   :  { %2314 = vmatmul.mubr.bf16.vlgmr.msra.gmra.mrb[0].mxu1 %v3041_v36  ;;  %3381 = vmatpush3.bf16.msra.mxu0 %v3766_v40  ;;  %v3824_v36 = vld [vmem:[#allocation6 + $0x270] sm:$0xff]   ;;  %v3828_v40 = vld [vmem:[#allocation6 + $0x278] sm:$0xff]  }
  0x5b   :  { %3403 = vmatpush3.bf16.msra.mxu1 %v3767_v41  ;;  %3382 = vmatprep.subr.bf16.mxu0 %v3768_v42  ;;  %v3829_v41 = vld [vmem:[#allocation6 + $0x2f8] sm:$0xff]  }
  0x5c   :  { %3404 = vmatprep.subr.bf16.mxu1 %v3769_v43  ;;  %2353 = vmatprep.mubr.bf16.mxu0 %v3044_v8  ;;  %v3830_v42 = vld [vmem:[#allocation6 + $0x238] sm:$0xff]   ;;  %v3858_v8 = vld [vmem:[#allocation6 + $0x328] sm:$0xff]  }
  0x5d   :  { %2393 = vmatprep.mubr.bf16.mxu1 %v3046_v11  ;;  %v3831_v43 = vld [vmem:[#allocation6 + $0x2b8] sm:$0xff]   ;;  %v3861_v11 = vld [vmem:[#allocation6 + $0x3f0] sm:$0xff]  }
  0x5e   :  { %3383 = vmatpush3.bf16.msra.mxu0 %v3770_v44  ;;  %v69_v44 = vld [vmem:[#allocation3 + $0x20] sm:$0xff] }
  0x5f   :  { %3405 = vmatpush3.bf16.msra.mxu1 %v3771_v45  ;;  %3384 = vmatprep.subr.bf16.mxu0 %v3772_v46  ;;  %v70_v45 = vld [vmem:[#allocation3 + $0x28] sm:$0xff]  ;;  %v3047_v46 = vcombine.low %v69_v44, %v69_v44 }
  0x60   :  { %3406 = vmatprep.subr.bf16.mxu1 %v3773_v47  ;;  %v3048_v47 = vcombine.high %v69_v44, %v69_v44  ;;  %v3892_v44 = vld [vmem:[#allocation6 + $0x468] sm:$0xff]  }
  0x62   :  { %3385 = vmatpush3.bf16.msra.mxu0 %v3774_v48  ;;  %v3049_v48 = vcombine.low %v70_v45, %v70_v45 }
  0x63   :  { %3407 = vmatpush3.bf16.msra.mxu1 %v3775_v49  ;;  %3386 = vmatprep.subr.bf16.mxu0 %v3776_v50  ;;  %v3050_v49 = vcombine.high %v70_v45, %v70_v45  ;;  %v3836_v50 = vld [vmem:[#allocation6 + $0x340] sm:$0xff]   ;;  %v3893_v45 = vld [vmem:[#allocation6 + $0x4e8] sm:$0xff]  }
  0x64   :  { %3408 = vmatprep.subr.bf16.mxu1 %v3777_v51  ;;  %v3837_v51 = vld [vmem:[#allocation6 + $0x3c0] sm:$0xff]  }
  0x66   :  { %3387 = vmatpush3.bf16.msra.mxu0 %v3778_v52  ;;  %v3838_v52 = vld [vmem:[#allocation6 + $0x300] sm:$0xff]  }
  0x67   :  { %3409 = vmatpush3.bf16.msra.mxu1 %v3779_v53  ;;  %3388 = vmatprep.subr.bf16.mxu0 %v3780_v54  ;;  %v3839_v53 = vld [vmem:[#allocation6 + $0x380] sm:$0xff]   ;;  %v3840_v54 = vld [vmem:[#allocation6 + $0x348] sm:$0xff]  }
  0x68   :  { %3410 = vmatprep.subr.bf16.mxu1 %v3781_v55  ;;  %v3841_v55 = vld [vmem:[#allocation6 + $0x3c8] sm:$0xff]  }
  0x6a   :  { %3389 = vmatpush3.bf16.msra.mxu0 %v3782_v56  ;;  %v3842_v56 = vld [vmem:[#allocation6 + $0x308] sm:$0xff]  }
  0x6b   :  { %3411 = vmatpush3.bf16.msra.mxu1 %v3783_v57  ;;  %3390 = vmatprep.subr.bf16.mxu0 %v3784_v58  ;;  %v3843_v57 = vld [vmem:[#allocation6 + $0x388] sm:$0xff]   ;;  %v3844_v58 = vld [vmem:[#allocation6 + $0x350] sm:$0xff]  }
  0x6c   :  { %3412 = vmatprep.subr.bf16.mxu1 %v3785_v59  ;;  %v3845_v59 = vld [vmem:[#allocation6 + $0x3d0] sm:$0xff]  }
  0x6e   :  { %3391 = vmatpush3.bf16.msra.mxu0 %v3786_v60  ;;  %v3846_v60 = vld [vmem:[#allocation6 + $0x310] sm:$0xff]  }
  0x6f   :  { %3413 = vmatpush3.bf16.msra.mxu1 %v3787_v61  ;;  %3392 = vmatprep.subr.bf16.mxu0 %v3788_v62  ;;  %v3847_v61 = vld [vmem:[#allocation6 + $0x390] sm:$0xff]   ;;  %v3848_v62 = vld [vmem:[#allocation6 + $0x358] sm:$0xff]  }
  0x70   :  { %3414 = vmatprep.subr.bf16.mxu1 %v3789_v63  ;;  %v3849_v63 = vld [vmem:[#allocation6 + $0x3d8] sm:$0xff]  }
  0x72   :  { %3393 = vmatpush3.bf16.msra.mxu0 %v3790_v0  ;;  %v3850_v0 = vld [vmem:[#allocation6 + $0x318] sm:$0xff]  }
  0x73   :  { %3415 = vmatpush3.bf16.msra.mxu1 %v3791_v1  ;;  %3394 = vmatprep.subr.bf16.mxu0 %v3792_v2  ;;  %v3851_v1 = vld [vmem:[#allocation6 + $0x398] sm:$0xff]   ;;  %v3852_v2 = vld [vmem:[#allocation6 + $0x360] sm:$0xff]  }
  0x74   :  { %3416 = vmatprep.subr.bf16.mxu1 %v3793_v3  ;;  %v3853_v3 = vld [vmem:[#allocation6 + $0x3e0] sm:$0xff]  }
  0x76   :  { %3395 = vmatpush3.bf16.msra.mxu0 %v3794_v4  ;;  %v3854_v4 = vld [vmem:[#allocation6 + $0x320] sm:$0xff]  }
  0x77   :  { %3417 = vmatpush3.bf16.msra.mxu1 %v3795_v5  ;;  %3424 = vmatprep.subr.bf16.mxu0 %v3800_v12  ;;  %v3855_v5 = vld [vmem:[#allocation6 + $0x3a0] sm:$0xff]   ;;  %v3862_v12 = vld [vmem:[#allocation6 + $0x330] sm:$0xff]  }
  0x78   :  { %3446 = vmatprep.subr.bf16.mxu1 %v3801_v13  ;;  %v3863_v13 = vld [vmem:[#allocation6 + $0x3b0] sm:$0xff]  }
  0x79   :  { %2354 = vmatmul.mubr.bf16.vlgmr.msra.gmra.mrb[4].mxu0 %v3043_v7  ;;  %v3857_v7 = vld [vmem:[#allocation6 + $0x3e8] sm:$0xff]  }
  0x7a   :  { %2394 = vmatmul.mubr.bf16.vlgmr.msra.gmra.mrb[4].mxu1 %v3045_v10  ;;  %3425 = vmatpush3.bf16.msra.mxu0 %v3802_v14  ;;  %v3860_v10 = vld [vmem:[#allocation6 + $0x370] sm:$0xff]   ;;  %v3864_v14 = vld [vmem:[#allocation6 + $0x378] sm:$0xff]  }
  0x7b   :  { %3447 = vmatpush3.bf16.msra.mxu1 %v3803_v15  ;;  %3426 = vmatprep.subr.bf16.mxu0 %v3804_v16  ;;  %v3865_v15 = vld [vmem:[#allocation6 + $0x3f8] sm:$0xff]  }
  0x7c   :  { %3448 = vmatprep.subr.bf16.mxu1 %v3805_v17  ;;  %2433 = vmatprep.mubr.bf16.mxu0 %v3048_v47  ;;  %v3866_v16 = vld [vmem:[#allocation6 + $0x338] sm:$0xff]   ;;  %v3895_v47 = vld [vmem:[#allocation6 + $0x4a8] sm:$0xff]  }
  0x7d   :  { %2473 = vmatprep.mubr.bf16.mxu1 %v3050_v49  ;;  %v3867_v17 = vld [vmem:[#allocation6 + $0x3b8] sm:$0xff]   ;;  %v3897_v49 = vld [vmem:[#allocation6 + $0x4f0] sm:$0xff]  }
  0x7e   :  { %3427 = vmatpush3.bf16.msra.mxu0 %v3806_v18  ;;  %v71_v18 = vld [vmem:[#allocation3 + $0x30] sm:$0xff] }
  0x7f   :  { %3449 = vmatpush3.bf16.msra.mxu1 %v3807_v19  ;;  %3428 = vmatprep.subr.bf16.mxu0 %v3808_v20  ;;  %v72_v19 = vld [vmem:[#allocation3 + $0x38] sm:$0xff]  ;;  %v3051_v20 = vcombine.low %v71_v18, %v71_v18 }
  0x80   :  { %3450 = vmatprep.subr.bf16.mxu1 %v3809_v21  ;;  %v3052_v21 = vcombine.high %v71_v18, %v71_v18  ;;  %v3928_v18 = vld [vmem:[#allocation6 + $0x568] sm:$0xff]  }
  0x82   :  { %3429 = vmatpush3.bf16.msra.mxu0 %v3810_v22  ;;  %v3053_v22 = vcombine.low %v72_v19, %v72_v19 }
  0x83   :  { %3451 = vmatpush3.bf16.msra.mxu1 %v3811_v23  ;;  %3430 = vmatprep.subr.bf16.mxu0 %v3812_v24  ;;  %v3872_v23 = vld [vmem:[#allocation6 + $0x440] sm:$0xff]   ;;  %v3054_v24 = vcombine.high %v72_v19, %v72_v19  ;;  %v3929_v19 = vld [vmem:[#allocation6 + $0x5e8] sm:$0xff]  }
  0x84   :  { %3452 = vmatprep.subr.bf16.mxu1 %v3813_v25  ;;  %v3873_v25 = vld [vmem:[#allocation6 + $0x4c0] sm:$0xff]  }
  0x86   :  { %3431 = vmatpush3.bf16.msra.mxu0 %v3814_v26  ;;  %v3874_v26 = vld [vmem:[#allocation6 + $0x400] sm:$0xff]  }
  0x87   :  { %3453 = vmatpush3.bf16.msra.mxu1 %v3815_v27  ;;  %3432 = vmatprep.subr.bf16.mxu0 %v3816_v28  ;;  %v3875_v27 = vld [vmem:[#allocation6 + $0x480] sm:$0xff]   ;;  %v3876_v28 = vld [vmem:[#allocation6 + $0x448] sm:$0xff]  }
  0x88   :  { %3454 = vmatprep.subr.bf16.mxu1 %v3817_v29  ;;  %v3877_v29 = vld [vmem:[#allocation6 + $0x4c8] sm:$0xff]  }
  0x8a   :  { %3433 = vmatpush3.bf16.msra.mxu0 %v3818_v30  ;;  %v3878_v30 = vld [vmem:[#allocation6 + $0x408] sm:$0xff]  }
  0x8b   :  { %3455 = vmatpush3.bf16.msra.mxu1 %v3819_v31  ;;  %3434 = vmatprep.subr.bf16.mxu0 %v3820_v32  ;;  %v3879_v31 = vld [vmem:[#allocation6 + $0x488] sm:$0xff]   ;;  %v3880_v32 = vld [vmem:[#allocation6 + $0x450] sm:$0xff]  }
  0x8c   :  { %3456 = vmatprep.subr.bf16.mxu1 %v3821_v33  ;;  %v3881_v33 = vld [vmem:[#allocation6 + $0x4d0] sm:$0xff]  }
  0x8e   :  { %3435 = vmatpush3.bf16.msra.mxu0 %v3822_v34  ;;  %v3882_v34 = vld [vmem:[#allocation6 + $0x410] sm:$0xff]  }
  0x8f   :  { %3457 = vmatpush3.bf16.msra.mxu1 %v3823_v35  ;;  %3436 = vmatprep.subr.bf16.mxu0 %v3824_v36  ;;  %v3883_v35 = vld [vmem:[#allocation6 + $0x490] sm:$0xff]   ;;  %v3884_v36 = vld [vmem:[#allocation6 + $0x458] sm:$0xff]  }
  0x90   :  { %3458 = vmatprep.subr.bf16.mxu1 %v3825_v37  ;;  %v3885_v37 = vld [vmem:[#allocation6 + $0x4d8] sm:$0xff]  }
  0x92   :  { %3437 = vmatpush3.bf16.msra.mxu0 %v3826_v38  ;;  %v3886_v38 = vld [vmem:[#allocation6 + $0x418] sm:$0xff]  }
  0x93   :  { %3459 = vmatpush3.bf16.msra.mxu1 %v3827_v39  ;;  %3438 = vmatprep.subr.bf16.mxu0 %v3828_v40  ;;  %v3887_v39 = vld [vmem:[#allocation6 + $0x498] sm:$0xff]   ;;  %v3888_v40 = vld [vmem:[#allocation6 + $0x460] sm:$0xff]  }
  0x94   :  { %3460 = vmatprep.subr.bf16.mxu1 %v3829_v41  ;;  %v3889_v41 = vld [vmem:[#allocation6 + $0x4e0] sm:$0xff]  }
  0x96   :  { %3439 = vmatpush3.bf16.msra.mxu0 %v3830_v42  ;;  %v3890_v42 = vld [vmem:[#allocation6 + $0x420] sm:$0xff]  }
  0x97   :  { %3461 = vmatpush3.bf16.msra.mxu1 %v3831_v43  ;;  %3468 = vmatprep.subr.bf16.mxu0 %v3836_v50  ;;  %v3891_v43 = vld [vmem:[#allocation6 + $0x4a0] sm:$0xff]   ;;  %v3898_v50 = vld [vmem:[#allocation6 + $0x430] sm:$0xff]  }
  0x98   :  { %3490 = vmatprep.subr.bf16.mxu1 %v3837_v51  ;;  %v3899_v51 = vld [vmem:[#allocation6 + $0x4b0] sm:$0xff]  }
  0x99   :  { %2434 = vmatmul.mubr.bf16.vlgmr.msra.gmra.mrb[8].mxu0 %v3047_v46  ;;  %v3894_v46 = vld [vmem:[#allocation6 + $0x428] sm:$0xff]  }
  0x9a   :  { %2474 = vmatmul.mubr.bf16.vlgmr.msra.gmra.mrb[8].mxu1 %v3049_v48  ;;  %3469 = vmatpush3.bf16.msra.mxu0 %v3838_v52  ;;  %v3896_v48 = vld [vmem:[#allocation6 + $0x470] sm:$0xff]   ;;  %v3900_v52 = vld [vmem:[#allocation6 + $0x478] sm:$0xff]  }
  0x9b   :  { %3491 = vmatpush3.bf16.msra.mxu1 %v3839_v53  ;;  %3470 = vmatprep.subr.bf16.mxu0 %v3840_v54  ;;  %v3901_v53 = vld [vmem:[#allocation6 + $0x4f8] sm:$0xff]  }
  0x9c   :  { %3492 = vmatprep.subr.bf16.mxu1 %v3841_v55  ;;  %2513 = vmatprep.mubr.bf16.mxu0 %v3052_v21  ;;  %v3902_v54 = vld [vmem:[#allocation6 + $0x438] sm:$0xff]   ;;  %v3931_v21 = vld [vmem:[#allocation6 + $0x5a8] sm:$0xff]  }
  0x9d   :  { %2553 = vmatprep.mubr.bf16.mxu1 %v3054_v24  ;;  %v3903_v55 = vld [vmem:[#allocation6 + $0x4b8] sm:$0xff]   ;;  %v3934_v24 = vld [vmem:[#allocation6 + $0x530] sm:$0xff]  }
  0x9e   :  { %3471 = vmatpush3.bf16.msra.mxu0 %v3842_v56  ;;  %v73_v56 = vld [vmem:[#allocation3 + $0x40] sm:$0xff] }
  0x9f   :  { %3493 = vmatpush3.bf16.msra.mxu1 %v3843_v57  ;;  %3472 = vmatprep.subr.bf16.mxu0 %v3844_v58  ;;  %v3055_v57 = vcombine.low %v73_v56, %v73_v56  ;;  %v3056_v58 = vcombine.high %v73_v56, %v73_v56  ;;  %v3964_v56 = vld [vmem:[#allocation6 + $0x668] sm:$0xff]  }
  0xa0   :  { %3494 = vmatprep.subr.bf16.mxu1 %v3845_v59  ;;  %v74_v59 = vld [vmem:[#allocation3 + $0x48] sm:$0xff] }
  0xa2   :  { %3473 = vmatpush3.bf16.msra.mxu0 %v3846_v60  ;;  %v3057_v60 = vcombine.low %v74_v59, %v74_v59 }
  0xa3   :  { %3495 = vmatpush3.bf16.msra.mxu1 %v3847_v61  ;;  %3474 = vmatprep.subr.bf16.mxu0 %v3848_v62  ;;  %v3058_v61 = vcombine.high %v74_v59, %v74_v59  ;;  %v3908_v62 = vld [vmem:[#allocation6 + $0x540] sm:$0xff]   ;;  %v3967_v59 = vld [vmem:[#allocation6 + $0x6a8] sm:$0xff]  }
  0xa4   :  { %3496 = vmatprep.subr.bf16.mxu1 %v3849_v63  ;;  %v3909_v63 = vld [vmem:[#allocation6 + $0x5c0] sm:$0xff]  }
  0xa6   :  { %3475 = vmatpush3.bf16.msra.mxu0 %v3850_v0  ;;  %v3910_v0 = vld [vmem:[#allocation6 + $0x500] sm:$0xff]  }
  0xa7   :  { %3497 = vmatpush3.bf16.msra.mxu1 %v3851_v1  ;;  %3476 = vmatprep.subr.bf16.mxu0 %v3852_v2  ;;  %v3911_v1 = vld [vmem:[#allocation6 + $0x580] sm:$0xff]   ;;  %v3912_v2 = vld [vmem:[#allocation6 + $0x548] sm:$0xff]  }
  0xa8   :  { %3498 = vmatprep.subr.bf16.mxu1 %v3853_v3  ;;  %v3913_v3 = vld [vmem:[#allocation6 + $0x5c8] sm:$0xff]  }
  0xaa   :  { %3477 = vmatpush3.bf16.msra.mxu0 %v3854_v4  ;;  %v3914_v4 = vld [vmem:[#allocation6 + $0x508] sm:$0xff]  }
  0xab   :  { %3499 = vmatpush3.bf16.msra.mxu1 %v3855_v5  ;;  %3478 = vmatprep.subr.bf16.mxu0 %v3856_v6  ;;  %v3915_v5 = vld [vmem:[#allocation6 + $0x588] sm:$0xff]   ;;  %v3916_v6 = vld [vmem:[#allocation6 + $0x550] sm:$0xff]  }
  0xac   :  { %3500 = vmatprep.subr.bf16.mxu1 %v3857_v7  ;;  %v3917_v7 = vld [vmem:[#allocation6 + $0x5d0] sm:$0xff]  }
  0xae   :  { %3479 = vmatpush3.bf16.msra.mxu0 %v3858_v8  ;;  %v3918_v8 = vld [vmem:[#allocation6 + $0x510] sm:$0xff]  }
  0xaf   :  { %3501 = vmatpush3.bf16.msra.mxu1 %v3859_v9  ;;  %3480 = vmatprep.subr.bf16.mxu0 %v3860_v10  ;;  %v3919_v9 = vld [vmem:[#allocation6 + $0x590] sm:$0xff]   ;;  %v3920_v10 = vld [vmem:[#allocation6 + $0x558] sm:$0xff]  }
  0xb0   :  { %3502 = vmatprep.subr.bf16.mxu1 %v3861_v11  ;;  %v3921_v11 = vld [vmem:[#allocation6 + $0x5d8] sm:$0xff]  }
  0xb2   :  { %3481 = vmatpush3.bf16.msra.mxu0 %v3862_v12  ;;  %v3922_v12 = vld [vmem:[#allocation6 + $0x518] sm:$0xff]  }
  0xb3   :  { %3503 = vmatpush3.bf16.msra.mxu1 %v3863_v13  ;;  %3482 = vmatprep.subr.bf16.mxu0 %v3864_v14  ;;  %v3923_v13 = vld [vmem:[#allocation6 + $0x598] sm:$0xff]   ;;  %v3924_v14 = vld [vmem:[#allocation6 + $0x560] sm:$0xff]  }
  0xb4   :  { %3504 = vmatprep.subr.bf16.mxu1 %v3865_v15  ;;  %v3925_v15 = vld [vmem:[#allocation6 + $0x5e0] sm:$0xff]  }
  0xb6   :  { %3483 = vmatpush3.bf16.msra.mxu0 %v3866_v16  ;;  %v3926_v16 = vld [vmem:[#allocation6 + $0x520] sm:$0xff]  }
  0xb7   :  { %3505 = vmatpush3.bf16.msra.mxu1 %v3867_v17  ;;  %3512 = vmatprep.subr.bf16.mxu0 %v3872_v23  ;;  %v3927_v17 = vld [vmem:[#allocation6 + $0x5a0] sm:$0xff]   ;;  %v3933_v23 = vld [vmem:[#allocation6 + $0x5f0] sm:$0xff]  }
  0xb8   :  { %3534 = vmatprep.subr.bf16.mxu1 %v3873_v25  ;;  %v3935_v25 = vld [vmem:[#allocation6 + $0x5b0] sm:$0xff]  }
  0xb9   :  { %2514 = vmatmul.mubr.bf16.vlgmr.msra.gmra.mrb[12].mxu0 %v3051_v20  ;;  %v3930_v20 = vld [vmem:[#allocation6 + $0x528] sm:$0xff]  }
  0xba   :  { %2554 = vmatmul.mubr.bf16.vlgmr.msra.gmra.mrb[12].mxu1 %v3053_v22  ;;  %3513 = vmatpush3.bf16.msra.mxu0 %v3874_v26  ;;  %v3932_v22 = vld [vmem:[#allocation6 + $0x570] sm:$0xff]   ;;  %v3936_v26 = vld [vmem:[#allocation6 + $0x578] sm:$0xff]  }
  0xbb   :  { %3535 = vmatpush3.bf16.msra.mxu1 %v3875_v27  ;;  %3514 = vmatprep.subr.bf16.mxu0 %v3876_v28  ;;  %v3937_v27 = vld [vmem:[#allocation6 + $0x5f8] sm:$0xff]  }
  0xbc   :  { %3536 = vmatprep.subr.bf16.mxu1 %v3877_v29  ;;  %2593 = vmatprep.mubr.bf16.mxu0 %v3056_v58  ;;  %v3938_v28 = vld [vmem:[#allocation6 + $0x538] sm:$0xff]   ;;  %v3966_v58 = vld [vmem:[#allocation6 + $0x628] sm:$0xff]  }
  0xbd   :  { %2633 = vmatprep.mubr.bf16.mxu1 %v3058_v61  ;;  %v3939_v29 = vld [vmem:[#allocation6 + $0x5b8] sm:$0xff]   ;;  %v3969_v61 = vld [vmem:[#allocation6 + $0x6f0] sm:$0xff]  }
  0xbe   :  { %3515 = vmatpush3.bf16.msra.mxu0 %v3878_v30  ;;  %v75_v30 = vld [vmem:[#allocation3 + $0x50] sm:$0xff] }
  0xbf   :  { %3537 = vmatpush3.bf16.msra.mxu1 %v3879_v31  ;;  %3516 = vmatprep.subr.bf16.mxu0 %v3880_v32  ;;  %v76_v31 = vld [vmem:[#allocation3 + $0x58] sm:$0xff]  ;;  %v3059_v32 = vcombine.low %v75_v30, %v75_v30 }
  0xc0   :  { %3538 = vmatprep.subr.bf16.mxu1 %v3881_v33  ;;  %v3060_v33 = vcombine.high %v75_v30, %v75_v30  ;;  %v3999_v30 = vld [vmem:[#allocation6 + $0x7a0] sm:$0xff]  }
  0xc2   :  { %3517 = vmatpush3.bf16.msra.mxu0 %v3882_v34  ;;  %v3061_v34 = vcombine.low %v76_v31, %v76_v31 }
  0xc3   :  { %3539 = vmatpush3.bf16.msra.mxu1 %v3883_v35  ;;  %3518 = vmatprep.subr.bf16.mxu0 %v3884_v36  ;;  %v3062_v35 = vcombine.high %v76_v31, %v76_v31  ;;  %v3944_v36 = vld [vmem:[#allocation6 + $0x640] sm:$0xff]  }
  0xc4   :  { %3540 = vmatprep.subr.bf16.mxu1 %v3885_v37  ;;  %v3945_v37 = vld [vmem:[#allocation6 + $0x6c0] sm:$0xff]  }
  0xc6   :  { %3519 = vmatpush3.bf16.msra.mxu0 %v3886_v38  ;;  %v3946_v38 = vld [vmem:[#allocation6 + $0x600] sm:$0xff]  }
  0xc7   :  { %3541 = vmatpush3.bf16.msra.mxu1 %v3887_v39  ;;  %3520 = vmatprep.subr.bf16.mxu0 %v3888_v40  ;;  %v3947_v39 = vld [vmem:[#allocation6 + $0x680] sm:$0xff]   ;;  %v3948_v40 = vld [vmem:[#allocation6 + $0x648] sm:$0xff]  }
  0xc8   :  { %3542 = vmatprep.subr.bf16.mxu1 %v3889_v41  ;;  %v3949_v41 = vld [vmem:[#allocation6 + $0x6c8] sm:$0xff]  }
  0xca   :  { %3521 = vmatpush3.bf16.msra.mxu0 %v3890_v42  ;;  %v3950_v42 = vld [vmem:[#allocation6 + $0x608] sm:$0xff]  }
  0xcb   :  { %3543 = vmatpush3.bf16.msra.mxu1 %v3891_v43  ;;  %3522 = vmatprep.subr.bf16.mxu0 %v3892_v44  ;;  %v3951_v43 = vld [vmem:[#allocation6 + $0x688] sm:$0xff]   ;;  %v3952_v44 = vld [vmem:[#allocation6 + $0x650] sm:$0xff]  }
  0xcc   :  { %3544 = vmatprep.subr.bf16.mxu1 %v3893_v45  ;;  %v3953_v45 = vld [vmem:[#allocation6 + $0x6d0] sm:$0xff]  }
  0xce   :  { %3523 = vmatpush3.bf16.msra.mxu0 %v3894_v46  ;;  %v3954_v46 = vld [vmem:[#allocation6 + $0x610] sm:$0xff]  }
  0xcf   :  { %3545 = vmatpush3.bf16.msra.mxu1 %v3895_v47  ;;  %3524 = vmatprep.subr.bf16.mxu0 %v3896_v48  ;;  %v3955_v47 = vld [vmem:[#allocation6 + $0x690] sm:$0xff]   ;;  %v3956_v48 = vld [vmem:[#allocation6 + $0x658] sm:$0xff]  }
  0xd0   :  { %3546 = vmatprep.subr.bf16.mxu1 %v3897_v49  ;;  %v3957_v49 = vld [vmem:[#allocation6 + $0x6d8] sm:$0xff]  }
  0xd2   :  { %3525 = vmatpush3.bf16.msra.mxu0 %v3898_v50  ;;  %v3958_v50 = vld [vmem:[#allocation6 + $0x618] sm:$0xff]  }
  0xd3   :  { %3547 = vmatpush3.bf16.msra.mxu1 %v3899_v51  ;;  %3526 = vmatprep.subr.bf16.mxu0 %v3900_v52  ;;  %v3959_v51 = vld [vmem:[#allocation6 + $0x698] sm:$0xff]   ;;  %v3960_v52 = vld [vmem:[#allocation6 + $0x660] sm:$0xff]  }
  0xd4   :  { %3548 = vmatprep.subr.bf16.mxu1 %v3901_v53  ;;  %v3961_v53 = vld [vmem:[#allocation6 + $0x6e0] sm:$0xff]  }
  0xd6   :  { %3527 = vmatpush3.bf16.msra.mxu0 %v3902_v54  ;;  %v3962_v54 = vld [vmem:[#allocation6 + $0x620] sm:$0xff]  }
  0xd7   :  { %3549 = vmatpush3.bf16.msra.mxu1 %v3903_v55  ;;  %3556 = vmatprep.subr.bf16.mxu0 %v3908_v62  ;;  %v3963_v55 = vld [vmem:[#allocation6 + $0x6a0] sm:$0xff]   ;;  %v3970_v62 = vld [vmem:[#allocation6 + $0x630] sm:$0xff]  }
  0xd8   :  { %3578 = vmatprep.subr.bf16.mxu1 %v3909_v63  ;;  %v3971_v63 = vld [vmem:[#allocation6 + $0x6b0] sm:$0xff]  }
  0xd9   :  { %2594 = vmatmul.mubr.bf16.vlgmr.msra.gmra.mrb[16].mxu0 %v3055_v57  ;;  %v3965_v57 = vld [vmem:[#allocation6 + $0x6e8] sm:$0xff]  }
  0xda   :  { %2634 = vmatmul.mubr.bf16.vlgmr.msra.gmra.mrb[16].mxu1 %v3057_v60  ;;  %3557 = vmatpush3.bf16.msra.mxu0 %v3910_v0  ;;  %v3968_v60 = vld [vmem:[#allocation6 + $0x670] sm:$0xff]   ;;  %v3972_v0 = vld [vmem:[#allocation6 + $0x678] sm:$0xff]  }
  0xdb   :  { %3579 = vmatpush3.bf16.msra.mxu1 %v3911_v1  ;;  %3558 = vmatprep.subr.bf16.mxu0 %v3912_v2  ;;  %v3973_v1 = vld [vmem:[#allocation6 + $0x6f8] sm:$0xff]  }
  0xdc   :  { %3580 = vmatprep.subr.bf16.mxu1 %v3913_v3  ;;  %2673 = vmatprep.mubr.bf16.mxu0 %v3060_v33  ;;  %v3974_v2 = vld [vmem:[#allocation6 + $0x638] sm:$0xff]   ;;  %v4000_v33 = vld [vmem:[#allocation6 + $0x768] sm:$0xff]  }
  0xdd   :  { %2713 = vmatprep.mubr.bf16.mxu1 %v3062_v35  ;;  %v3975_v3 = vld [vmem:[#allocation6 + $0x6b8] sm:$0xff]  }
  0xde   :  { %3559 = vmatpush3.bf16.msra.mxu0 %v3914_v4  ;;  %v77_v4 = vld [vmem:[#allocation3 + $0x60] sm:$0xff] }
  0xdf   :  { %3581 = vmatpush3.bf16.msra.mxu1 %v3915_v5  ;;  %3560 = vmatprep.subr.bf16.mxu0 %v3916_v6  ;;  %v78_v5 = vld [vmem:[#allocation3 + $0x68] sm:$0xff]  ;;  %v3063_v6 = vcombine.low %v77_v4, %v77_v4 }
  0xe0   :  { %3582 = vmatprep.subr.bf16.mxu1 %v3917_v7  ;;  %v3064_v7 = vcombine.high %v77_v4, %v77_v4 }
  0xe2   :  { %3561 = vmatpush3.bf16.msra.mxu0 %v3918_v8  ;;  %v3065_v8 = vcombine.low %v78_v5, %v78_v5 }
  0xe3   :  { %3583 = vmatpush3.bf16.msra.mxu1 %v3919_v9  ;;  %3562 = vmatprep.subr.bf16.mxu0 %v3920_v10  ;;  %v3980_v9 = vld [vmem:[#allocation6 + $0x740] sm:$0xff]   ;;  %v3066_v10 = vcombine.high %v78_v5, %v78_v5 }
  0xe4   :  { %3584 = vmatprep.subr.bf16.mxu1 %v3921_v11  ;;  %v3981_v11 = vld [vmem:[#allocation6 + $0x7c0] sm:$0xff]  }
  0xe6   :  { %3563 = vmatpush3.bf16.msra.mxu0 %v3922_v12  ;;  %v3982_v12 = vld [vmem:[#allocation6 + $0x700] sm:$0xff]  }
  0xe7   :  { %3585 = vmatpush3.bf16.msra.mxu1 %v3923_v13  ;;  %3564 = vmatprep.subr.bf16.mxu0 %v3924_v14  ;;  %v3983_v13 = vld [vmem:[#allocation6 + $0x780] sm:$0xff]   ;;  %v3984_v14 = vld [vmem:[#allocation6 + $0x748] sm:$0xff]  }
  0xe8   :  { %3586 = vmatprep.subr.bf16.mxu1 %v3925_v15  ;;  %v3985_v15 = vld [vmem:[#allocation6 + $0x7c8] sm:$0xff]  }
  0xea   :  { %3565 = vmatpush3.bf16.msra.mxu0 %v3926_v16  ;;  %v3986_v16 = vld [vmem:[#allocation6 + $0x708] sm:$0xff]  }
  0xeb   :  { %3587 = vmatpush3.bf16.msra.mxu1 %v3927_v17  ;;  %3566 = vmatprep.subr.bf16.mxu0 %v3928_v18  ;;  %v3987_v17 = vld [vmem:[#allocation6 + $0x788] sm:$0xff]   ;;  %v3988_v18 = vld [vmem:[#allocation6 + $0x750] sm:$0xff]  }
  0xec   :  { %3588 = vmatprep.subr.bf16.mxu1 %v3929_v19  ;;  %v3989_v19 = vld [vmem:[#allocation6 + $0x7d0] sm:$0xff]  }
  0xee   :  { %3567 = vmatpush3.bf16.msra.mxu0 %v3930_v20  ;;  %v3990_v20 = vld [vmem:[#allocation6 + $0x710] sm:$0xff]  }
  0xef   :  { %3589 = vmatpush3.bf16.msra.mxu1 %v3931_v21  ;;  %3568 = vmatprep.subr.bf16.mxu0 %v3932_v22  ;;  %v3991_v21 = vld [vmem:[#allocation6 + $0x790] sm:$0xff]   ;;  %v3992_v22 = vld [vmem:[#allocation6 + $0x758] sm:$0xff]  }
  0xf0   :  { %3590 = vmatprep.subr.bf16.mxu1 %v3933_v23  ;;  %v3993_v23 = vld [vmem:[#allocation6 + $0x7d8] sm:$0xff]  }
  0xf2   :  { %3569 = vmatpush3.bf16.msra.mxu0 %v3934_v24  ;;  %v3994_v24 = vld [vmem:[#allocation6 + $0x718] sm:$0xff]  }
  0xf3   :  { %3591 = vmatpush3.bf16.msra.mxu1 %v3935_v25  ;;  %3570 = vmatprep.subr.bf16.mxu0 %v3936_v26  ;;  %v3995_v25 = vld [vmem:[#allocation6 + $0x798] sm:$0xff]   ;;  %v3996_v26 = vld [vmem:[#allocation6 + $0x760] sm:$0xff]  }
  0xf4   :  { %3592 = vmatprep.subr.bf16.mxu1 %v3937_v27  ;;  %v3997_v27 = vld [vmem:[#allocation6 + $0x7e0] sm:$0xff]  }
  0xf6   :  { %3571 = vmatpush3.bf16.msra.mxu0 %v3938_v28  ;;  %v3998_v28 = vld [vmem:[#allocation6 + $0x720] sm:$0xff]  }
  0xf7   :  { %3593 = vmatpush3.bf16.msra.mxu1 %v3939_v29  ;;  %3600 = vmatprep.subr.bf16.mxu0 %v3944_v36  ;;  %v4001_v36 = vld [vmem:[#allocation6 + $0x7e8] sm:$0xff]  }
  0xf8   :  { %3622 = vmatprep.subr.bf16.mxu1 %v3945_v37 }
  0xf9   :  { %2674 = vmatmul.mubr.bf16.vlgmr.msra.gmra.mrb[20].mxu0 %v3059_v32 }
  0xfa   :  { %2714 = vmatmul.mubr.bf16.vlgmr.msra.gmra.mrb[20].mxu1 %v3061_v34  ;;  %3601 = vmatpush3.bf16.msra.mxu0 %v3946_v38 }
  0xfb   :  { %3623 = vmatpush3.bf16.msra.mxu1 %v3947_v39  ;;  %3602 = vmatprep.subr.bf16.mxu0 %v3948_v40  ;;  %v4002_v40 = vld [vmem:[#allocation6 + $0x728] sm:$0xff]  }
  0xfc   :  { %3624 = vmatprep.subr.bf16.mxu1 %v3949_v41  ;;  %2753 = vmatprep.mubr.bf16.mxu0 %v3064_v7 }
  0xfd   :  { %2793 = vmatprep.mubr.bf16.mxu1 %v3066_v10 }
  0xfe   :  { %3603 = vmatpush3.bf16.msra.mxu0 %v3950_v42 }
  0xff   :  { %3625 = vmatpush3.bf16.msra.mxu1 %v3951_v43  ;;  %3604 = vmatprep.subr.bf16.mxu0 %v3952_v44  ;;  %v4003_v43 = vld [vmem:[#allocation6 + $0x7a8] sm:$0xff]  }
 0x100   :  { %3626 = vmatprep.subr.bf16.mxu1 %v3953_v45  ;;  %v4004_v45 = vld [vmem:[#allocation6 + $0x770] sm:$0xff]  }
 0x102   :  { %3605 = vmatpush3.bf16.msra.mxu0 %v3954_v46  ;;  %v4005_v46 = vld [vmem:[#allocation6 + $0x7f0] sm:$0xff]  }
 0x103   :  { %3627 = vmatpush3.bf16.msra.mxu1 %v3955_v47  ;;  %3606 = vmatprep.subr.bf16.mxu0 %v3956_v48  ;;  %v4006_v47 = vld [vmem:[#allocation6 + $0x730] sm:$0xff]  }
 0x104   :  { %3628 = vmatprep.subr.bf16.mxu1 %v3957_v49  ;;  %v4007_v48 = vld [vmem:[#allocation6 + $0x7b0] sm:$0xff]   ;;  %v4008_v49 = vld [vmem:[#allocation6 + $0x778] sm:$0xff]  }
 0x106   :  { %3607 = vmatpush3.bf16.msra.mxu0 %v3958_v50  ;;  %v4009_v50 = vld [vmem:[#allocation6 + $0x7f8] sm:$0xff]  }
 0x107   :  { %3629 = vmatpush3.bf16.msra.mxu1 %v3959_v51  ;;  %3608 = vmatprep.subr.bf16.mxu0 %v3960_v52  ;;  %v4010_v51 = vld [vmem:[#allocation6 + $0x738] sm:$0xff]  }
 0x108   :  { %3630 = vmatprep.subr.bf16.mxu1 %v3961_v53  ;;  %v4011_v52 = vld [vmem:[#allocation6 + $0x7b8] sm:$0xff]   ;;  %v79_v53 = vld [vmem:[#allocation3 + $0x70] sm:$0xff] }
 0x10a   :  { %3609 = vmatpush3.bf16.msra.mxu0 %v3962_v54  ;;  %v80_v54 = vld [vmem:[#allocation3 + $0x78] sm:$0xff] }
 0x10b   :  { %3631 = vmatpush3.bf16.msra.mxu1 %v3963_v55  ;;  %3610 = vmatprep.subr.bf16.mxu0 %v3964_v56  ;;  %v3067_v55 = vcombine.low %v79_v53, %v79_v53  ;;  %v3068_v56 = vcombine.high %v79_v53, %v79_v53 }
 0x10c   :  { %3632 = vmatprep.subr.bf16.mxu1 %v3965_v57  ;;  %v3069_v57 = vcombine.low %v80_v54, %v80_v54 }
 0x10e   :  { %3611 = vmatpush3.bf16.msra.mxu0 %v3966_v58  ;;  %v3070_v58 = vcombine.high %v80_v54, %v80_v54 }
 0x10f   :  { %3633 = vmatpush3.bf16.msra.mxu1 %v3967_v59  ;;  %3612 = vmatprep.subr.bf16.mxu0 %v3968_v60 }
 0x110   :  { %3634 = vmatprep.subr.bf16.mxu1 %v3969_v61 }
 0x112   :  { %3613 = vmatpush3.bf16.msra.mxu0 %v3970_v62 }
 0x113   :  { %3635 = vmatpush3.bf16.msra.mxu1 %v3971_v63  ;;  %3614 = vmatprep.subr.bf16.mxu0 %v3972_v0 }
 0x114   :  { %3636 = vmatprep.subr.bf16.mxu1 %v3973_v1 }
 0x116   :  { %3615 = vmatpush3.bf16.msra.mxu0 %v3974_v2 }
 0x117   :  { %3637 = vmatpush3.bf16.msra.mxu1 %v3975_v3  ;;  %3644 = vmatprep.subr.bf16.mxu0 %v3980_v9 }
 0x118   :  { %3666 = vmatprep.subr.bf16.mxu1 %v3981_v11 }
 0x119   :  { %2754 = vmatmul.mubr.bf16.vlgmr.msra.gmra.mrb[24].mxu0 %v3063_v6 }
 0x11a   :  { %2794 = vmatmul.mubr.bf16.vlgmr.msra.gmra.mrb[24].mxu1 %v3065_v8  ;;  %3645 = vmatpush3.bf16.msra.mxu0 %v3982_v12 }
 0x11b   :  { %3667 = vmatpush3.bf16.msra.mxu1 %v3983_v13  ;;  %3646 = vmatprep.subr.bf16.mxu0 %v3984_v14 }
 0x11c   :  { %3668 = vmatprep.subr.bf16.mxu1 %v3985_v15  ;;  %2833 = vmatprep.mubr.bf16.mxu0 %v3068_v56 }
 0x11d   :  { %2873 = vmatprep.mubr.bf16.mxu1 %v3070_v58 }
 0x11e   :  { %3647 = vmatpush3.bf16.msra.mxu0 %v3986_v16 }
 0x11f   :  { %3669 = vmatpush3.bf16.msra.mxu1 %v3987_v17  ;;  %3648 = vmatprep.subr.bf16.mxu0 %v3988_v18 }
 0x120   :  { %3670 = vmatprep.subr.bf16.mxu1 %v3989_v19 }
 0x122   :  { %3649 = vmatpush3.bf16.msra.mxu0 %v3990_v20 }
 0x123   :  { %3671 = vmatpush3.bf16.msra.mxu1 %v3991_v21  ;;  %3650 = vmatprep.subr.bf16.mxu0 %v3992_v22 }
 0x124   :  { %3672 = vmatprep.subr.bf16.mxu1 %v3993_v23 }
 0x126   :  { %3651 = vmatpush3.bf16.msra.mxu0 %v3994_v24 }
 0x127   :  { %3673 = vmatpush3.bf16.msra.mxu1 %v3995_v25  ;;  %3652 = vmatprep.subr.bf16.mxu0 %v3996_v26 }
 0x128   :  { %3674 = vmatprep.subr.bf16.mxu1 %v3997_v27 }
 0x12a   :  { %3653 = vmatpush3.bf16.msra.mxu0 %v3998_v28 }
 0x12b   :  { %3675 = vmatpush3.bf16.msra.mxu1 %v3999_v30  ;;  %3654 = vmatprep.subr.bf16.mxu0 %v4000_v33  ;;  %v4017_v33 = vld [vmem:[#allocation8 + $0x8] sm:$0xff]  }
 0x12c   :  { %v3352_v29 = vpop.f32.mrb[0].mxu0  ;;  %3676 = vmatprep.subr.bf16.mxu1 %v4001_v36 }
 0x12d   :  { %v3374_v31 = vpop.f32.mrb[0].mxu1  ;;  %v3353_v32 = vpop.f32.mrb[1].mxu0 }
 0x12e   :  { %v3354_v34 = vadd.f32 %v3353_v32, %v3352_v29  ;;  %v3375_v35 = vpop.f32.mrb[1].mxu1  ;;  %v3355_v38 = vpop.f32.mrb[2].mxu0  ;;  %3655 = vmatpush3.bf16.msra.mxu0 %v4002_v40  ;;  %v4149_v32 = vmov 0.0  }
 0x12f   :  { %v3376_v37 = vadd.f32 %v3375_v35, %v3374_v31  ;;  %v3377_v39 = vpop.f32.mrb[2].mxu1  ;;  %v3356_v41 = vpop.f32.mrb[3].mxu0  ;;  %3677 = vmatpush3.bf16.msra.mxu1 %v4003_v43  ;;  %3656 = vmatprep.subr.bf16.mxu0 %v4004_v45  ;;  %v4016_v31 = vld [vmem:[#allocation8] sm:$0xff]  }
 0x130   :  { %v3378_v44 = vpop.f32.mrb[3].mxu1  ;;  %3678 = vmatprep.subr.bf16.mxu1 %v4005_v46 }
 0x131   :  { %v2316_v42 = vadd.f32 %v3376_v37, %v3354_v34 }
 0x132   :  { %3657 = vmatpush3.bf16.msra.mxu0 %v4006_v47 }
 0x133   :  { %3679 = vmatpush3.bf16.msra.mxu1 %v4007_v48  ;;  %3658 = vmatprep.subr.bf16.mxu0 %v4008_v49 }
 0x134   :  { %3680 = vmatprep.subr.bf16.mxu1 %v4009_v50 }
 0x136   :  { %3659 = vmatpush3.bf16.msra.mxu0 %v4010_v51 }
 0x137   :  { %3681 = vmatpush3.bf16.msra.mxu1 %v4011_v52  ;;  %3697 = vmatprep.subr.bf16.mxu0 %v4149_v32 }
 0x139   :  { %2834 = vmatmul.mubr.bf16.vlgmr.msra.gmra.mrb[28].mxu0 %v3067_v55 }
 0x13a   :  { %2874 = vmatmul.mubr.bf16.vlgmr.msra.gmra.mrb[28].mxu1 %v3069_v57  ;;  %3698 = vmatpush3.bf16.msra.mxu0 %v4016_v31 }
 0x13b   :  { %3699 = vmatprep.subr.bf16.mxu0 %v4149_v32  ;;  %3713 = vmatprep.mubr.msk.bf16.mxu0 %vm4150_vm0, %v4149_v32 }
 0x13e   :  { %3700 = vmatpush3.bf16.msra.mxu0 %v4017_v33 }
 0x13f   :  { %3701 = vmatprep.subr.bf16.mxu0 %v4149_v32 }
 0x14c   :  { %v3396_v59 = vpop.f32.mrb[4].mxu0 }
 0x14d   :  { %v3418_v60 = vpop.f32.mrb[4].mxu1  ;;  %v3397_v61 = vpop.f32.mrb[5].mxu0 }
 0x14e   :  { %v3419_v62 = vpop.f32.mrb[5].mxu1  ;;  %v3398_v63 = vadd.f32 %v3397_v61, %v3396_v59  ;;  %v3399_v1 = vpop.f32.mrb[6].mxu0 }
 0x14f   :  { %v3420_v0 = vadd.f32 %v3419_v62, %v3418_v60  ;;  %v3421_v2 = vpop.f32.mrb[6].mxu1  ;;  %v3400_v3 = vpop.f32.mrb[7].mxu0 }
 0x150   :  { %v3422_v4 = vpop.f32.mrb[7].mxu1  ;;  %v2356_v5 = vadd.f32 %v3398_v63, %v2316_v42 }
 0x152   :  { %v2396_v6 = vadd.f32 %v3420_v0, %v2356_v5 }
 0x16c   :  { %v3440_v7 = vpop.f32.mrb[8].mxu0 }
 0x16d   :  { %v3462_v8 = vpop.f32.mrb[8].mxu1  ;;  %v3441_v9 = vpop.f32.mrb[9].mxu0 }
 0x16e   :  { %v3442_v10 = vadd.f32 %v3441_v9, %v3440_v7  ;;  %v3463_v11 = vpop.f32.mrb[9].mxu1  ;;  %v3443_v12 = vpop.f32.mrb[10].mxu0 }
 0x16f   :  { %v3464_v13 = vadd.f32 %v3463_v11, %v3462_v8  ;;  %v3465_v14 = vpop.f32.mrb[10].mxu1  ;;  %v3444_v15 = vpop.f32.mrb[11].mxu0 }
 0x170   :  { %v2436_v16 = vadd.f32 %v3442_v10, %v2396_v6  ;;  %v3466_v17 = vpop.f32.mrb[11].mxu1 }
 0x172   :  { %v2476_v18 = vadd.f32 %v3464_v13, %v2436_v16 }
 0x18c   :  { %v3484_v19 = vpop.f32.mrb[12].mxu0 }
 0x18d   :  { %v3506_v20 = vpop.f32.mrb[12].mxu1  ;;  %v3485_v21 = vpop.f32.mrb[13].mxu0 }
 0x18e   :  { %v3486_v22 = vadd.f32 %v3485_v21, %v3484_v19  ;;  %v3507_v23 = vpop.f32.mrb[13].mxu1  ;;  %v3487_v24 = vpop.f32.mrb[14].mxu0  ;;  %v4018_v19 = vld [vmem:[#allocation8 + $0x10] sm:$0xff]   ;;  %v4020_v21 = vld [vmem:[#allocation8 + $0x20] sm:$0xff]  }
 0x18f   :  { %v3508_v25 = vadd.f32 %v3507_v23, %v3506_v20  ;;  %v3509_v26 = vpop.f32.mrb[14].mxu1  ;;  %v3488_v27 = vpop.f32.mrb[15].mxu0  ;;  %3702 = vmatpush3.bf16.msra.mxu0 %v4018_v19  ;;  %v4019_v20 = vld [vmem:[#allocation8 + $0x18] sm:$0xff]   ;;  %v4022_v23 = vld [vmem:[#allocation8 + $0x30] sm:$0xff]  }
 0x190   :  { %v2516_v28 = vadd.f32 %v3486_v22, %v2476_v18  ;;  %v3510_v29 = vpop.f32.mrb[15].mxu1  ;;  %3703 = vmatprep.subr.bf16.mxu0 %v4149_v32  ;;  %v4021_v22 = vld [vmem:[#allocation8 + $0x28] sm:$0xff]   ;;  %v4023_v24 = vld [vmem:[#allocation8 + $0x38] sm:$0xff]   ;;  %v4151_v26 = vmov 0  }
 0x191   :  { %3727 = vset.pattern.permute.xlu0 %v4151_v26 }
 0x192   :  { %v2556_v30 = vadd.f32 %v3508_v25, %v2516_v28  ;;  %v2995_v25 = vld [vmem:[%s4265_s3] sm:$0xff] }
 0x193   :  { %3704 = vmatpush3.bf16.msra.mxu0 %v4019_v20 }
 0x194   :  { %3705 = vmatprep.subr.bf16.mxu0 %v4149_v32 }
 0x197   :  { %3706 = vmatpush3.bf16.msra.mxu0 %v4020_v21 }
 0x198   :  { %3707 = vmatprep.subr.bf16.mxu0 %v4149_v32 }
 0x19b   :  { %3708 = vmatpush3.bf16.msra.mxu0 %v4021_v22 }
 0x19c   :  { %3709 = vmatprep.subr.bf16.mxu0 %v4149_v32 }
 0x19f   :  { %3710 = vmatpush3.bf16.msra.mxu0 %v4022_v23 }
 0x1a0   :  { %3711 = vmatprep.subr.bf16.mxu0 %v4149_v32 }
 0x1a3   :  { %3712 = vmatpush3.bf16.msra.mxu0 %v4023_v24 }
 0x1ac   :  { %v3528_v34 = vpop.f32.mrb[16].mxu0 }
 0x1ad   :  { %v3550_v35 = vpop.f32.mrb[16].mxu1  ;;  %v3529_v36 = vpop.f32.mrb[17].mxu0 }
 0x1ae   :  { %v3551_v37 = vpop.f32.mrb[17].mxu1  ;;  %v3530_v38 = vadd.f32 %v3529_v36, %v3528_v34  ;;  %v3531_v40 = vpop.f32.mrb[18].mxu0 }
 0x1af   :  { %v3552_v39 = vadd.f32 %v3551_v37, %v3550_v35  ;;  %v3553_v41 = vpop.f32.mrb[18].mxu1  ;;  %v3532_v42 = vpop.f32.mrb[19].mxu0 }
 0x1b0   :  { %v3554_v43 = vpop.f32.mrb[19].mxu1  ;;  %v2596_v44 = vadd.f32 %v3530_v38, %v2556_v30 }
 0x1b2   :  { %v2636_v45 = vadd.f32 %v3552_v39, %v2596_v44 }
 0x1cc   :  { %v3572_v46 = vpop.f32.mrb[20].mxu0 }
 0x1cd   :  { %v3594_v47 = vpop.f32.mrb[20].mxu1  ;;  %v3573_v48 = vpop.f32.mrb[21].mxu0 }
 0x1ce   :  { %v3574_v49 = vadd.f32 %v3573_v48, %v3572_v46  ;;  %v3595_v50 = vpop.f32.mrb[21].mxu1  ;;  %v3575_v51 = vpop.f32.mrb[22].mxu0 }
 0x1cf   :  { %v3596_v52 = vadd.f32 %v3595_v50, %v3594_v47  ;;  %v3597_v53 = vpop.f32.mrb[22].mxu1  ;;  %v3576_v54 = vpop.f32.mrb[23].mxu0 }
 0x1d0   :  { %v2676_v55 = vadd.f32 %v3574_v49, %v2636_v45  ;;  %v3598_v56 = vpop.f32.mrb[23].mxu1 }
 0x1d2   :  { %v2716_v57 = vadd.f32 %v3596_v52, %v2676_v55 }
 0x1ec   :  { %v3616_v58 = vpop.f32.mrb[24].mxu0 }
 0x1ed   :  { %v3638_v59 = vpop.f32.mrb[24].mxu1  ;;  %v3617_v60 = vpop.f32.mrb[25].mxu0 }
 0x1ee   :  { %v3618_v61 = vadd.f32 %v3617_v60, %v3616_v58  ;;  %v3639_v62 = vpop.f32.mrb[25].mxu1  ;;  %v3619_v63 = vpop.f32.mrb[26].mxu0 }
 0x1ef   :  { %v3640_v0 = vadd.f32 %v3639_v62, %v3638_v59  ;;  %v3641_v1 = vpop.f32.mrb[26].mxu1  ;;  %v3620_v2 = vpop.f32.mrb[27].mxu0 }
 0x1f0   :  { %v2756_v3 = vadd.f32 %v3618_v61, %v2716_v57  ;;  %v3642_v4 = vpop.f32.mrb[27].mxu1 }
 0x1f2   :  { %v2796_v5 = vadd.f32 %v3640_v0, %v2756_v3 }
 0x20c   :  { %v3660_v6 = vpop.f32.mrb[28].mxu0 }
 0x20d   :  { %v3682_v7 = vpop.f32.mrb[28].mxu1  ;;  %v3661_v8 = vpop.f32.mrb[29].mxu0 }
 0x20e   :  { %v3662_v9 = vadd.f32 %v3661_v8, %v3660_v6  ;;  %v3683_v10 = vpop.f32.mrb[29].mxu1  ;;  %v3663_v11 = vpop.f32.mrb[30].mxu0 }
 0x20f   :  { %v3684_v12 = vadd.f32 %v3683_v10, %v3682_v7  ;;  %v3685_v13 = vpop.f32.mrb[30].mxu1  ;;  %v3664_v14 = vpop.f32.mrb[31].mxu0 }
 0x210   :  { %v2836_v15 = vadd.f32 %v3662_v9, %v2796_v5  ;;  %v3686_v16 = vpop.f32.mrb[31].mxu1 }
 0x212   :  { %v2876_v17 = vadd.f32 %v3684_v12, %v2836_v15 }
 0x214   :  { %2881 = vst [vmem:[#allocation9] sm:$0xff] %v2876_v17  ;;  %v2882_v18 = vmul.f32 %v2876_v17, %v2876_v17 }
 0x216   :  { %2883 = vadd.xlane.f32.xlu0 %v2882_v18 }
 0x22c   :  { %3002 = vperm.xlu0 %3727, %v2995_v25  }
 0x2a3   :  { %v2884_v27 = vpop.xlane.xlu0 %2883 }
 0x2a4   :  { %v2885_v28 = vmax.f32 %v2884_v27, 1e-24 }
 0x2a6   :  { %4024 = vrsqrt.f32 %v2885_v28 }
 0x2b0   :  { %v4025_v29 = vpop.eup %4024 }
 0x2b1   :  { %v2887_v30 = vmul.f32 %v4025_v29, %v2876_v17 }
 0x2b3   :  { %v2888_v31 = vpack.c.bf16 %v2887_v30, %v2887_v30 }
 0x2b5   :  { %2889 = vst [vmem:[#allocation2] sm:$0xf] %v2888_v31 }
 0x2bc   :  { %v2890_v33 = vld [vmem:[#allocation2] sm:$0xf] }
 0x2bd   :  { %3714 = vmatmul.mubr.bf16.vlgmr.msra.gmra.mrb[32].mxu0 %v2890_v33 }
 0x2be   :  { %4103 = shalt.err (!%p4100_p0)
}
 0x2bf   :  { %s4104_s9 = scalar_lea.hbm %s4266_s4, 128 }
 0x2c0   :  { %p4105_p1 = scmp.ne.s32.totalorder %s4266_s4, %s4104_s9  ;;  %p4108_p2 = scmp.lt.u32.totalorder %s4104_s9, %s4266_s4 }
 0x2c2   :  { %p4110_p3 = pnand %p4108_p2, %p4105_p1 }
 0x2c4   :  { %4113 = shalt.err (!%p4110_p3)
}
 0x2c5   :  { %3018 = dma.vmem_to_hbm [thread:$0]  %s3016_s6, 128, %s4266_s4, [#allocation5]   ;;  %v2996_v32 = vlaneseq  ;;  %v3003_v35 = vpop.permute.xlu0 %3002 }
 0x2c6   :  { %s4153_s16 = smov [#allocation10]  }
 0x2c7   :  { %v2997_v34 = vand.u32 127, %v2996_v32  ;;  %s3025_s17 = sshll.u32 %s4153_s16, 4  ;;  %s3026_s17 = int_to_ptr.vmem [resolvable:$true] %s3025_s17 }
 0x2c8   :  { %s4114_s1 = scalar_lea.vmem %s3026_s17, 128  ;;  %p4119_p5 = scmp.lt.s32.totalorder %s3026_s17, %s3026_s17 }
 0x2c9   :  { %vm3004_vm1 = vcmp.eq.s32.totalorder %v2997_v34, %v3003_v35  ;;  %p4115_p4 = scmp.ne.s32.totalorder %s3026_s17, %s4114_s1  ;;  %p4120_p6 = scmp.lt.s32.totalorder %s4114_s1, %s4114_s1 }
 0x2cb   :  { %p4121_p7 = por %p4120_p6, %p4119_p5 }
 0x2cd   :  { %p4122_p8 = pnand %p4121_p7, %p4115_p4 }
 0x390   :  { %v2989_v36 = vpop.f32.mrb[32].mxu0 }
 0x391   :  { %v3335_v37 = vadd.f32 -0.35, %v2989_v36  ;;  %v3715_v38 = vpop.f32.mrb[33].mxu0 }
 0x392   :  { %v2992_v39 = vpop.f32.mrb[34].mxu0 }
 0x393   :  { %v3006_v40 = vsel %vm3004_vm1, %v3335_v37, %v2989_v36  ;;  %v3716_v41 = vpop.f32.mrb[35].mxu0 }
 0x394   :  { %v3007_v42 = vmul.f32 64.0, %v3006_v40 }
 0x396   :  { %3008 = vst [vmem:[#allocation10] sm:$0xff] %v3007_v42 }
 0x397   :  { %4125 = shalt.err (!%p4122_p8)
}
 0x398   :  { %s4126_s19 = scalar_lea.hbm %s4267_s5, 128 }
 0x399   :  { %p4127_p9 = scmp.ne.s32.totalorder %s4267_s5, %s4126_s19  ;;  %p4130_p10 = scmp.lt.u32.totalorder %s4126_s19, %s4267_s5 }
 0x39b   :  { %p4132_p11 = pnand %p4130_p10, %p4127_p9 }
 0x39d   :  { %4135 = shalt.err (!%p4132_p11)
}
 0x39e   :  { %3028 = dma.vmem_to_hbm [thread:$0]  %s3026_s17, 128, %s4267_s5, [#allocation11]  }
 0x39f   :  { %4140 = dma.done.wait [#allocation5], 128  }
 0x3a0   :  { %4141 = vsyncadd [#allocation5], 4294967168 }
 0x3a1   :  { %4142 = dma.done.wait [#allocation11], 128  }
 0x3a2   :  { %4143 = vsyncadd [#allocation11], 4294967168 }
 0x3a3   :  { %3035 = vsyncpa [#allocation4], 1 }
 0x3a4   :  { %3036 = vsyncpa [#allocation7], 1 }
 0x3a5   :  { %3037 = vsyncpa [#allocation5], 1 }
 0x3a6   :  { %3038 = vsyncpa [#allocation11], 1 }

</bundles_post_ra>
